<compile_context>
chip_gen: v6e
topology: v6e:2x2x1
jax: 0.10.0
libtpu: 0.0.40
codegen_flags: <defaults>
</compile_context>

<pallas_src>
import functools
from typing import NamedTuple, Optional, List, Dict, Tuple

import jax
import jax.numpy as jnp
from jax.experimental import pallas as pl
from jax.experimental.pallas import tpu as pltpu


class ImageList(NamedTuple):
    tensors: jnp.ndarray
    image_sizes: List[Tuple[int, int]]


def _round_up(x: int, m: int) -> int:
    return ((x + m - 1) // m) * m


# ----------------------------------------------------------------------------
# Crop kernels.  grid = (N, C // c_tile); each step copies one channel-tile of
# one image's top-left [crop_h, crop_w] window.
# ----------------------------------------------------------------------------
def _crop_copy_kernel(img_ref, out_ref):
    # Input block is exactly the crop window: pure DMA-pipelined copy.
    out_ref[...] = img_ref[...]


def _crop_slice_kernel(img_ref, out_ref, *, crop_h: int, crop_w: int):
    # img_ref: (1, c_tile, in_rows, in_cols)  -> slice rows/cols in-kernel.
    out_ref[...] = img_ref[:, :, :crop_h, :crop_w]


def crop_images(images: jnp.ndarray, crop_h: int, crop_w: int) -> jnp.ndarray:
    """images: (N, C, H, W) -> (N, C, crop_h, crop_w) (top-left crop)."""
    n, c, h, w = images.shape
    itemsize = jnp.dtype(images.dtype).itemsize
    sub = 32 // itemsize  # sublane packing unit: 8 (f32) / 16 (bf16) / 32 (int8)

    # Input block: smallest legal window covering the crop.
    # Rows: multiple of the packing unit OR the full H; cols: multiple of 128
    # OR the full W.  This cuts the HBM read to ~round_up(crop,·) instead of
    # the full image while staying within the (8,128) BlockSpec rule.
    if crop_h % sub == 0 or crop_h == h:
        in_rows = crop_h
    else:
        in_rows = min(h, _round_up(crop_h, sub))
    if crop_w % 128 == 0 or crop_w == w:
        in_cols = crop_w
    else:
        in_cols = min(w, _round_up(crop_w, 128))

    # Channel tiling so double-buffered (input + output) blocks stay well under
    # every generation's VMEM budget (v7x: 64 MiB physical, 32 MiB scoped).
    per_c_bytes = (in_rows * in_cols + crop_h * crop_w) * itemsize
    budget = 8 * 1024 * 1024  # per-step (in + out) block budget
    c_tile = 1
    for d in range(c, 0, -1):
        if c % d == 0 and d * per_c_bytes <= budget:
            c_tile = d
            break

    if in_rows == crop_h and in_cols == crop_w:
        kernel = _crop_copy_kernel
    else:
        kernel = functools.partial(_crop_slice_kernel,
                                   crop_h=crop_h, crop_w=crop_w)

    return pl.pallas_call(
        kernel,
        out_shape=jax.ShapeDtypeStruct((n, c, crop_h, crop_w), images.dtype),
        grid_spec=pltpu.PrefetchScalarGridSpec(
            num_scalar_prefetch=0,
            grid=(n, c // c_tile),
            in_specs=[pl.BlockSpec((1, c_tile, in_rows, in_cols),
                                   lambda i, j: (i, j, 0, 0))],
            out_specs=pl.BlockSpec((1, c_tile, crop_h, crop_w),
                                   lambda i, j: (i, j, 0, 0)),
        ),
        compiler_params=pltpu.CompilerParams(
            dimension_semantics=("parallel", "parallel"),
            vmem_limit_bytes=32 * 1024 * 1024),
    )(images)


# ----------------------------------------------------------------------------
# Batched box filtering (plain XLA; launch-overhead dominated as a kernel).
# Stable argsort pushes kept rows first, preserving their original order,
# which matches torch.index_select over the collected row indices.
# ----------------------------------------------------------------------------
def filter_boxes_batched(boxes_list: List[jnp.ndarray],
                         labels_list: List[jnp.ndarray],
                         crop_max: int):
    n = len(boxes_list)
    counts = [int(b.shape[0]) for b in boxes_list]
    m_max = max(counts) if counts else 0
    if m_max == 0:
        zero = jnp.zeros((), jnp.int32)
        return ([b for b in boxes_list], [l for l in labels_list],
                [zero for _ in range(n)], counts)

    box_dtype = boxes_list[0].dtype
    lab_dtype = labels_list[0].dtype
    boxes_pad = jnp.zeros((n, m_max, 4), box_dtype)
    labels_pad = jnp.zeros((n, m_max), lab_dtype)
    for i in range(n):
        if counts[i] > 0:
            boxes_pad = boxes_pad.at[i, :counts[i]].set(boxes_list[i])
            labels_pad = labels_pad.at[i, :counts[i]].set(labels_list[i])

    valid = jnp.arange(m_max)[None, :] < jnp.asarray(counts, jnp.int32)[:, None]
    keep = jnp.all(boxes_pad < jnp.asarray(crop_max, box_dtype), axis=-1) & valid
    # Kept rows first (stable), padding rows sort after real non-kept rows.
    order = jnp.argsort((~keep).astype(jnp.int32), axis=1, stable=True)
    boxes_sorted = jnp.take_along_axis(boxes_pad, order[..., None], axis=1)
    labels_sorted = jnp.take_along_axis(labels_pad, order, axis=1)
    kept_counts = jnp.sum(keep.astype(jnp.int32), axis=1)

    out_boxes = [boxes_sorted[i, :counts[i]] for i in range(n)]
    out_labels = [labels_sorted[i, :counts[i]] for i in range(n)]
    out_counts = [kept_counts[i] for i in range(n)]
    return out_boxes, out_labels, out_counts, counts


# ----------------------------------------------------------------------------
# The transform (forward pass) wrapper.
# ----------------------------------------------------------------------------
class GeneralizedRCNNTransform:
    def __init__(self, size_divisible: int = 32, crop_max: int = 64, **kwargs):
        self.size_divisible = size_divisible
        self.crop_max = crop_max

    def __call__(self,
                 images: jnp.ndarray,
                 targets: Optional[List[Dict[str, jnp.ndarray]]] = None):
        if images.ndim != 4:
            raise ValueError("images expected as [N, C, H, W]")
        if targets is not None:
            targets = [dict(t) for t in targets]

        n, _, h, w = images.shape
        do_crop = self.crop_max < w  # same gate as the PyTorch spec (checks W)

        if do_crop:
            # PyTorch slicing clamps, so the effective crop is min(dim, crop_max).
            crop_h = min(self.crop_max, h)
            crop_w = self.crop_max
            images_out = crop_images(images, crop_h, crop_w)

            if targets is not None:
                boxes_list = [t["boxes"] for t in targets]
                labels_list = [t["labels"] for t in targets]
                fb, fl, fc, _ = filter_boxes_batched(boxes_list, labels_list,
                                                     self.crop_max)
                for i in range(n):
                    # TODO(synk): variable-length output; rows beyond
                    # `valid_count` are padding (JAX needs static shapes).
                    targets[i] = {"boxes": fb[i], "labels": fl[i],
                                  "valid_count": fc[i]}
        else:
            images_out = images

        image_sizes = [(int(images_out.shape[-2]), int(images_out.shape[-1]))
                       for _ in range(n)]
        return ImageList(images_out, image_sizes), targets


# ----------------------------------------------------------------------------
# Demo / smoke test.
# ----------------------------------------------------------------------------
if __name__ == "__main__":
    key = jax.random.PRNGKey(0)
    k_img, k_box, k_lab, k_img2 = jax.random.split(key, 4)

    # --- Test 1: small shapes, sliced-block path, with targets -------------
    N, C, H, W = 2, 4, 16, 16
    CROP_MAX = 8           # < W so the crop hot path runs
    M = 6                  # boxes per image

    images = jax.random.normal(k_img, (N, C, H, W), dtype=jnp.float32)
    boxes = jax.random.uniform(k_box, (N, M, 4), minval=0.0, maxval=float(W),
                               dtype=jnp.float32)
    labels = jax.random.randint(k_lab, (N, M), 0, 10, dtype=jnp.int32)
    targets = [{"boxes": boxes[i], "labels": labels[i]} for i in range(N)]

    transform = GeneralizedRCNNTransform(size_divisible=32, crop_max=CROP_MAX)
    image_list, targets_out = transform(images, targets)

    out = jax.block_until_ready(image_list.tensors)
    for t in targets_out:
        jax.block_until_ready(t["boxes"])
        jax.block_until_ready(t["labels"])
        jax.block_until_ready(t["valid_count"])

    ref_crop = images[:, :, :CROP_MAX, :CROP_MAX]
    assert out.shape == (N, C, CROP_MAX, CROP_MAX)
    assert jnp.allclose(out, ref_crop)
    for i in range(N):
        ref_keep = jnp.all(boxes[i] < CROP_MAX, axis=-1)
        cnt = int(ref_keep.sum())
        assert int(targets_out[i]["valid_count"]) == cnt
        ref_boxes = boxes[i][ref_keep]
        ref_labels = labels[i][ref_keep]
        assert jnp.allclose(targets_out[i]["boxes"][:cnt], ref_boxes)
        assert jnp.array_equal(targets_out[i]["labels"][:cnt], ref_labels)
    assert image_list.image_sizes == [(CROP_MAX, CROP_MAX)] * N

    # --- Test 2: lane-aligned crop (pure DMA-copy path), no targets --------
    N2, C2, H2, W2 = 1, 3, 160, 256
    CROP2 = 128
    images2 = jax.random.normal(k_img2, (N2, C2, H2, W2), dtype=jnp.float32)
    transform2 = GeneralizedRCNNTransform(size_divisible=32, crop_max=CROP2)
    image_list2, _ = transform2(images2, None)
    out2 = jax.block_until_ready(image_list2.tensors)
    assert out2.shape == (N2, C2, CROP2, CROP2)
    assert jnp.allclose(out2, images2[:, :, :CROP2, :CROP2])
    assert image_list2.image_sizes == [(CROP2, CROP2)] * N2

    print("KERNEL_OK")
</pallas_src>

<mosaic_0001>
module attributes {stable_mosaic.version = 11 : i64} {
  func.func @_crop_slice_kernel(%arg0: i32, %arg1: i32, %arg2: memref<1x4x8x16xf32, #tpu.memory_space<vmem>>, %arg3: memref<1x4x8x8xf32, #tpu.memory_space<vmem>>) attributes {dimension_semantics = [#tpu.dimension_semantics<parallel>, #tpu.dimension_semantics<parallel>], iteration_bounds = array<i64: 2, 1>, scalar_prefetch = 0 : i64, scratch_operands = 0 : i64, tpu.core_type = #tpu.core_type<tc>, window_params = [{transform_indices = @transform_0, window_bounds = array<i64: 1, 4, 8, 16>}, {transform_indices = @transform_1, window_bounds = array<i64: 1, 4, 8, 8>}]} {
    %c0 = arith.constant 0 : index
    %c0_0 = arith.constant 0 : index
    %c0_1 = arith.constant 0 : index
    %c0_2 = arith.constant 0 : index
    %0 = vector.load %arg2[%c0, %c0_0, %c0_1, %c0_2] : memref<1x4x8x16xf32, #tpu.memory_space<vmem>>, vector<1x4x8x8xf32>
    %c0_3 = arith.constant 0 : index
    %c0_4 = arith.constant 0 : index
    %c0_5 = arith.constant 0 : index
    %c0_6 = arith.constant 0 : index
    %1 = vector.load %arg3[%c0_3, %c0_4, %c0_5, %c0_6] : memref<1x4x8x8xf32, #tpu.memory_space<vmem>>, vector<1x4x8x8xf32>
    tpu.vector_store %arg3[%c0_3, %c0_4, %c0_5, %c0_6], %0 {strides = array<i32>} : memref<1x4x8x8xf32, #tpu.memory_space<vmem>>, vector<1x4x8x8xf32>,
    return
  }
  func.func @transform_0(%arg0: i32, %arg1: i32) -> (i32, i32, i32, i32) {
    %c0_i32 = arith.constant 0 : i32
    %c0_i32_0 = arith.constant 0 : i32
    %c0_i32_1 = arith.constant 0 : i32
    return %arg0, %arg1, %c0_i32, %c0_i32_0 : i32, i32, i32, i32
  }
  func.func @transform_1(%arg0: i32, %arg1: i32) -> (i32, i32, i32, i32) {
    %c0_i32 = arith.constant 0 : i32
    %c0_i32_0 = arith.constant 0 : i32
    %c0_i32_1 = arith.constant 0 : i32
    return %arg0, %arg1, %c0_i32, %c0_i32_0 : i32, i32, i32, i32
  }
}

</mosaic_0001>

<bundles_post_ra>
// kernel: tpu_custom_call.1
= control target key start
LH: loop header
LB: loop body
LE: loop exit
PB: predicated region body
PF: predicated region fallthrough
CT: control target
= control target key end

     0   :  { %6 = vsyncpa [#allocation3], 0  ;;  %s623_s0 = inlined_call_operand.hbm [shape: f32[2,4,16,16], index: 0, kind: input, shape index: {}]   ;;  %s624_s1 = inlined_call_operand.hbm [shape: f32[2,4,8,8], index: 1, kind: output, shape index: {}]  }
   0x1   :  { %8 = vsyncpa [#allocation3 + $0x1], 0 }
   0x2   :  { %9 = vsyncpa [#allocation4], 0 }
   0x3   :  { %11 = vsyncpa [#allocation4 + $0x1], 0  ;;  %s479_s6 = smov 0   ;;  %s481_s7 = smov 0  }
   0x4   :  { %s483_s8 = smov 0   ;;  %s485_s9 = smov 0  }
   0x5   :  { %s487_s10 = smov 0   ;;  %s489_s11 = smov 0  }
   0x6 LB: > { %s268_s12 = sadd.s32 4294967295, %s460_s11   ;;  %s269_s13 = sadd.s32 4294967294, %s460_s11   ;;  %s460_s11 = sphi %s489_s11, %s17_s11   ;;  %s456_s10 = sphi %s487_s10, %s635_s10   ;;  %s452_s9 = sphi %s485_s9, %s634_s9   ;;  %s448_s8 = sphi %s483_s8, %s633_s8   ;;  %s444_s7 = sphi %s481_s7, %s632_s7   ;;  %s440_s6 = sphi %s479_s6, %s631_s6  }
   0x7   : > { %s29_s14 = sadd.s32 1, %s456_s10  ;;  %s38_s15 = sadd.s32 1, %s448_s8 }
   0x8   : > { %p31_p0 = scmp.ge.s32.totalorder %s29_s14, 2  ;;  %p45_p1 = scmp.ne.s32.totalorder %s448_s8, %s444_s7 }
   0x9   : > { %p46_p2 = scmp.eq.s32.totalorder %s460_s11, 0  ;;  %p51_p3 = scmp.ne.s32.totalorder %s444_s7, %s440_s6 }
   0xa   : > { %s637_s14 = smov (%p31_p0, %s29_s14), 0  ;;  %p52_p5 = scmp.eq.s32.totalorder %s268_s12, 0 }
   0xb   : > { %p520_p4 = por %p46_p2, %p45_p1  ;;  %s33_s17 = ssub.s32 %s456_s10, %s637_s14 }
   0xc   : > { %p77_p6 = scmp.eq.s32.totalorder %s268_s12, 1  ;;  %p36_p7 = scmp.eq.s32.totalorder %s33_s17, 0 }
   0xd   : > { %p526_p8 = por %p52_p5, %p51_p3  ;;  %p83_p10 = scmp.eq.s32.totalorder %s269_s13, 1 }
   0xe   : > { %p530_p9 = por %p77_p6, %p45_p1  ;;  %p297_p13 = scmp.lt.s32.totalorder %s460_s11, 2 }
   0xf   : > { %s535_s20 = scalar_select %p36_p7, %s448_s8, %s38_s15  }
  0x10   : > { %p537_p11 = por %p83_p10, %p51_p3  ;;  %s103_s22 = sand.u32 1, %s448_s8  }
  0x11   : > { %s272_s23 = sshll.u32 %s103_s22, 5  ;;  %s283_s24 = sshll.u32 %s456_s10, 10 }
  0x12   : > { %s116_s27 = scalar_lea.hbm %s623_s0, %s283_s24  ;;  %s107_s28 = scalar_lea.vmem [#allocation2], %s272_s23 }
  0x13   : > { %s117_s29 = sshll.u32 %s107_s28, 4  ;;  %p550_p0 = pnand %p297_p13, %p520_p4  ;;  %s118_s29 = int_to_ptr.vmem [resolvable:$true] %s117_s29 }
  0x14   : > { %s104_s2 = scalar_lea.sflag [#allocation3], %s103_s22  ;;  %s365_s3 = scalar_lea.vmem %s118_s29, 512 }
  0x15   : > { %p354_p1 = pneg %p550_p0  ;;  %p366_p2 = scmp.ne.s32.totalorder %s118_s29, %s365_s3 }
  0x16   : > { %s462_s4 = smov [#allocation2]  }
  0x17   : > { %p368_p3 = pnand %p366_p2, %p354_p1  ;;  %s370_s5 = sshll.u32 %s462_s4, 4  ;;  %s371_s5 = int_to_ptr.vmem [resolvable:$false] %s370_s5 }
  0x18   : > { %s372_s12 = scalar_lea.vmem %s371_s5, 1024  ;;  %p373_p6 = scmp.lt.s32.totalorder %s118_s29, %s371_s5 }
  0x19   : > { %p369_p5 = pneg %p368_p3  ;;  %p374_p7 = scmp.lt.s32.totalorder %s372_s12, %s365_s3 }
  0x1b   : > { %p375_p10 = por %p374_p7, %p373_p6 }
  0x1d   : > { %p376_p12 = pnand %p375_p10, %p369_p5 }
  0x1f   : > { %379 = shalt.err (!%p376_p12)
}
  0x20   : > { %s463_s13 = smov 256   ;;  %s464_s15 = smov 128  }
  0x21   : > { %s465_s16 = smov 8   ;;  %p275_p4 = scmp.ge.s32.totalorder %s460_s11, 1 }
  0x22   : > { %292 = dma.hbm_to_vmem [thread:$0]  (!%p550_p0), %s116_s27, 512, %s118_s29, %s104_s2, %s463_s13, %s464_s15, %s465_s16  }
  0x23   : > { %p125_p13 = scmp.lt.s32.totalorder %s460_s11, 3 }
  0x25   : > { %p126_p1 = pnand %p275_p4, %p125_p13 }
  0x26   : > { %s561_s17 = sand.u32 (!%p126_p1), 1, %s444_s7  }
  0x27   : > { %129 = sbr.rel (%p126_p1) target bundleno = 70 (0x46), region = 24  ;;  %s276_s22 = sshll.u32 (!%p126_p1), %s561_s17, 5 }
  0x28   : > { %s132_s23 = scalar_lea.sflag (!%p126_p1), [#allocation3], %s561_s17  ;;  %s135_s24 = scalar_lea.vmem (!%p126_p1), [#allocation2], %s276_s22 }
  0x2c   : > { %431 = dma.done.wait (%p526_p8), %s132_s23, 512  }
  0x2d   : > { %433 = vsyncadd (%p526_p8), %s132_s23, 4294966784  ;;  %s153_s25 = scalar_lea.vmem [#allocation5], %s276_s22  ;;  %s284_s27 = sshll.u32 %s452_s9, 9  ;;  %vm160_vm0 = vcmask 64512   ;;  %v156_v0 = vld [vmem:[%s135_s24] sm:$0xff]  ;;  %v157_v1 = vld [vmem:[%s135_s24 + $0x8] sm:$0xff] }
  0x2e   : > { %s181_s26 = sshll.u32 %s153_s25, 4  ;;  %s575_s30 = scalar_lea.hbm %s624_s1, %s284_s27  ;;  %v158_v2 = vld [vmem:[%s135_s24 + $0x10] sm:$0xff]  ;;  %161 = vst.msk [vmem:[%s153_s25] sm:$0xff] %vm160_vm0, %v156_v0  ;;  %162 = vst.msk [vmem:[%s153_s25 + $0x8] sm:$0xff] %vm160_vm0, %v157_v1  ;;  %v159_v3 = vld [vmem:[%s135_s24 + $0x18] sm:$0xff]  ;;  %s570_s26 = int_to_ptr.vmem [resolvable:$true] %s181_s26 }
  0x2f   : > { %163 = vst.msk [vmem:[%s153_s25 + $0x10] sm:$0xff] %vm160_vm0, %v158_v2  ;;  %164 = vst.msk [vmem:[%s153_s25 + $0x18] sm:$0xff] %vm160_vm0, %v159_v3  ;;  %s166_s9 = scalar_lea.sflag [#allocation4], %s561_s17  ;;  %s380_s18 = scalar_lea.vmem %s570_s26, 512 }
  0x30   : > { %p381_p8 = scmp.ne.s32.totalorder %s570_s26, %s380_s18  ;;  %s466_s2 = smov [#allocation5]  }
  0x31   : > { %s384_s3 = sshll.u32 %s466_s2, 4  ;;  %s385_s3 = int_to_ptr.vmem [resolvable:$false] %s384_s3 }
  0x32   : > { %p382_p12 = pnand %p381_p8, %p530_p9  ;;  %s386_s4 = scalar_lea.vmem %s385_s3, 1024 }
  0x33   : > { %p387_p2 = scmp.lt.s32.totalorder %s570_s26, %s385_s3  ;;  %p388_p3 = scmp.lt.s32.totalorder %s386_s4, %s380_s18 }
  0x34   : > { %p383_p0 = pneg %p382_p12 }
  0x35   : > { %p389_p5 = por %p388_p3, %p387_p2 }
  0x37   : > { %p390_p6 = pnand %p389_p5, %p383_p0 }
  0x39   : > { %393 = shalt.err (!%p390_p6)
}
  0x3a   : > { %s394_s5 = scalar_lea.hbm %s575_s30, 512  ;;  %s398_s15 = scalar_lea.hbm %s624_s1, 1024 }
  0x3b   : > { %p395_p7 = scmp.ne.s32.totalorder %s575_s30, %s394_s5  ;;  %p399_p13 = scmp.lt.s32.totalorder %s575_s30, %s624_s1 }
  0x3c   : > { %p400_p1 = scmp.lt.s32.totalorder %s398_s15, %s394_s5 }
  0x3d   : > { %p396_p10 = pnand %p395_p7, %p530_p9 }
  0x3e   : > { %p401_p8 = por %p400_p1, %p399_p13 }
  0x3f   : > { %p397_p4 = pneg %p396_p10 }
  0x41   : > { %p402_p12 = pnand %p401_p8, %p397_p4 }
  0x43   : > { %405 = shalt.err (!%p402_p12)
}
  0x44   : > { %s467_s23 = smov 128   ;;  %s468_s24 = smov 8  }
  0x45   : > { %287 = dma.vmem_to_hbm [thread:$0]  (%p530_p9), %s570_s26, 512, %s575_s30, %s166_s9, %s467_s23, %s467_s23, %s468_s24  }
  0x46 PF: > { %s196_s25 = sand.u32 1, %s440_s6   ;;  %p630_p0 = scmp.ge.s32.totalorder %s460_s11, 2 }
  0x47   : > { %s197_s27 = scalar_lea.sflag [#allocation4], %s196_s25 }
  0x48   : > { %p294_p2 = pnand %p630_p0, %p537_p11 }
  0x4a   : > { %p295_p3 = pneg %p294_p2 }
  0x4c   : > { %435 = dma.done.wait (%p295_p3), %s197_s27, 512  }
  0x4d   : > { %437 = vsyncadd (%p295_p3), %s197_s27, 4294966784  ;;  %s17_s11 = sadd.s32 1, %s460_s11   ;;  %s631_s6 = smov %s444_s7 }
  0x4e   : > { %p14_p5 = scmp.ge.s32.totalorder %s17_s11, 4   ;;  %s632_s7 = smov %s448_s8 }
  0x4f   : > { %s633_s8 = smov %s535_s20  ;;  %s634_s9 = smov %s456_s10 }
  0x50   : > { %s635_s10 = smov %s637_s14  ;;  %16 = sbr.rel (!%p14_p5) target bundleno = 6 (0x6), region = 69 }
  0x55   :  { %202 = vsyncpa [#allocation3], 1 }
  0x56   :  { %204 = vsyncpa [#allocation3 + $0x1], 1 }
  0x57   :  { %205 = vsyncpa [#allocation4], 1 }
  0x58   :  { %207 = vsyncpa [#allocation4 + $0x1], 1 }

</bundles_post_ra>
